<compile_context>
chip_gen: v6e
topology: v6e:2x2x1
jax: 0.10.0
libtpu: 0.0.40
codegen_flags: <defaults>
</compile_context>

<pallas_src>
import functools

import jax
import jax.numpy as jnp
from jax.experimental import pallas as pl
from jax.experimental.pallas import tpu as pltpu


def _hard_swish_kernel(x_ref, o_ref):
    # Elementwise HardSwish on one (block_rows, lanes) tile. Compute in f32
    # (no-op for f32 inputs); all ops map to the VPU.
    x = x_ref[...].astype(jnp.float32)
    inner = jnp.minimum(jnp.maximum(x + 3.0, 0.0), 6.0) * (1.0 / 6.0)
    o_ref[...] = (x * inner).astype(o_ref.dtype)


def _pallas_hard_swish_impl(x: jax.Array, *, lanes: int = 512, row_tile: int = 1024) -> jax.Array:
    orig_shape = x.shape
    orig_dtype = x.dtype
    n = x.size
    if n == 0:
        return x

    # Pad the flat length only up to a lane multiple (tiny; zero for aligned sizes).
    pad = (-n) % lanes
    x_flat = jnp.reshape(x, (-1,))
    if pad:
        x_flat = jnp.pad(x_flat, (0, pad))
    rows = x_flat.size // lanes
    x2d = x_flat.reshape(rows, lanes)

    if rows <= row_tile:
        # Single block covering the full array (block_shape == array shape is
        # always legal, even when rows is not a multiple of 8).
        block_rows = rows
        grid = (1,)
    else:
        # Tiled: block rows are a multiple of 8; the partial last block (if
        # rows % row_tile != 0) is handled by Pallas' masked edge writes.
        block_rows = row_tile
        grid = (pl.cdiv(rows, row_tile),)

    out2d = pl.pallas_call(
        _hard_swish_kernel,
        out_shape=jax.ShapeDtypeStruct((rows, lanes), orig_dtype),
        grid=grid,
        in_specs=[pl.BlockSpec((block_rows, lanes), lambda i: (i, 0))],
        out_specs=pl.BlockSpec((block_rows, lanes), lambda i: (i, 0)),
        # Same shape/dtype in and out -> let XLA reuse the buffer (cuts peak
        # HBM footprint; XLA copies only if the input is still live).
        input_output_aliases={0: 0},
        compiler_params=pltpu.CompilerParams(
            dimension_semantics=("parallel",),
        ),
    )(x2d)

    out_flat = out2d.reshape(-1)
    if pad:
        out_flat = out_flat[:n]
    return out_flat.reshape(orig_shape)


# Jit the wrapper: reshape/pad/slice fuse with the pallas_call into one XLA
# computation (no standalone full-array copy dispatches, no donation warnings).
pallas_hard_swish = jax.jit(
    _pallas_hard_swish_impl, static_argnames=("lanes", "row_tile")
)


def hard_swish(x, inplace: bool = False):
    # `inplace` is semantically irrelevant in JAX (immutable arrays).
    return pallas_hard_swish(x)


class HardSwishPallas:
    """Mirror of the PyTorch HardSwish module."""

    def __init__(self, inplace: bool = False):
        self.inplace = inplace  # no-op in JAX

    def __call__(self, x):
        return pallas_hard_swish(x)


if __name__ == "__main__":
    key = jax.random.PRNGKey(0)
    # NCHW input consistent with conv-net usage of this activation.
    x = jax.random.normal(key, (2, 4, 16, 16), dtype=jnp.float32)

    mod = HardSwishPallas()
    y = mod(x)
    y = jax.block_until_ready(y)

    # Correctness check against pure-JAX reference: x * relu6(x + 3) / 6.
    ref = x * jnp.clip(x + 3.0, 0.0, 6.0) / 6.0
    assert y.shape == x.shape and y.dtype == x.dtype
    assert jnp.max(jnp.abs(y - ref)) < 1e-5, float(jnp.max(jnp.abs(y - ref)))

    print("KERNEL_OK")
</pallas_src>

<mosaic_0001>
module attributes {stable_mosaic.version = 11 : i64} {
  func.func @_hard_swish_kernel(%arg0: i32, %arg1: memref<4x512xf32, #tpu.memory_space<vmem>>, %arg2: memref<4x512xf32, #tpu.memory_space<vmem>>) attributes {dimension_semantics = [#tpu.dimension_semantics<parallel>], iteration_bounds = array<i64: 1>, scalar_prefetch = 0 : i64, scratch_operands = 0 : i64, tpu.core_type = #tpu.core_type<tc>, window_params = [{transform_indices = @transform_0, window_bounds = array<i64: 4, 512>}, {transform_indices = @transform_1, window_bounds = array<i64: 4, 512>}]} {
    %c0 = arith.constant 0 : index
    %c0_0 = arith.constant 0 : index
    %0 = vector.load %arg1[%c0, %c0_0] : memref<4x512xf32, #tpu.memory_space<vmem>>, vector<4x512xf32>
    %cst = arith.constant 3.000000e+00 : f32
    %1 = vector.broadcast %cst : f32 to vector<4x512xf32>
    %2 = arith.addf %0, %1 : vector<4x512xf32>
    %cst_1 = arith.constant 0.000000e+00 : f32
    %3 = vector.broadcast %cst_1 : f32 to vector<4x512xf32>
    %4 = arith.maximumf %2, %3 : vector<4x512xf32>
    %cst_2 = arith.constant 6.000000e+00 : f32
    %5 = vector.broadcast %cst_2 : f32 to vector<4x512xf32>
    %6 = arith.minimumf %4, %5 : vector<4x512xf32>
    %cst_3 = arith.constant 0.166666672 : f32
    %7 = vector.broadcast %cst_3 : f32 to vector<4x512xf32>
    %8 = arith.mulf %6, %7 : vector<4x512xf32>
    %9 = arith.mulf %0, %8 : vector<4x512xf32>
    %c0_4 = arith.constant 0 : index
    %c0_5 = arith.constant 0 : index
    %10 = vector.load %arg2[%c0_4, %c0_5] : memref<4x512xf32, #tpu.memory_space<vmem>>, vector<4x512xf32>
    tpu.vector_store %arg2[%c0_4, %c0_5], %9 {strides = array<i32>} : memref<4x512xf32, #tpu.memory_space<vmem>>, vector<4x512xf32>,
    return
  }
  func.func @transform_0(%arg0: i32) -> (i32, i32) {
    %c0_i32 = arith.constant 0 : i32
    %c0_i32_0 = arith.constant 0 : i32
    return %arg0, %c0_i32 : i32, i32
  }
  func.func @transform_1(%arg0: i32) -> (i32, i32) {
    %c0_i32 = arith.constant 0 : i32
    %c0_i32_0 = arith.constant 0 : i32
    return %arg0, %c0_i32 : i32, i32
  }
}

</mosaic_0001>

<bundles_post_ra>
// kernel: _pallas_hard_swish_impl.1
= control target key start
LH: loop header
LB: loop body
LE: loop exit
PB: predicated region body
PF: predicated region fallthrough
CT: control target
= control target key end

     0   :  { %s48_s0 = inlined_call_operand.vmem [shape: f32[4,512], index: 0, kind: input, shape index: {}, may-alias: {0,1}]   ;;  %s49_s1 = inlined_call_operand.vmem [shape: f32[4,512], index: 1, kind: output, shape index: {}, may-alias: {0,1}]  }
   0x1   :  { %v8_v0 = vld [vmem:[%s48_s0] sm:$0xff]  ;;  %v9_v1 = vld [vmem:[%s48_s0 + $0x8] sm:$0xff] }
   0x2   :  { %v10_v2 = vadd.f32 3.0, %v8_v0  ;;  %v11_v3 = vadd.f32 3.0, %v9_v1 }
   0x4   :  { %v12_v4 = vmax.f32 %v10_v2, 0.0  ;;  %v13_v5 = vmax.f32 %v11_v3, 0.0 }
   0x6   :  { %v14_v6 = vmin.f32 %v12_v4, 6.0  ;;  %v15_v7 = vmin.f32 %v13_v5, 6.0 }
   0x8   :  { %v16_v8 = vmul.f32 0.16666667, %v14_v6  ;;  %v17_v9 = vmul.f32 0.16666667, %v15_v7 }
   0xa   :  { %v18_v10 = vmul.f32 %v16_v8, %v8_v0  ;;  %v19_v11 = vmul.f32 %v17_v9, %v9_v1 }
   0xc   :  { %20 = vst [vmem:[%s49_s1] sm:$0xff] %v18_v10  ;;  %21 = vst [vmem:[%s49_s1 + $0x8] sm:$0xff] %v19_v11 }

</bundles_post_ra>
